<compile_context>
chip_gen: v5e
topology: v5e:2x2
jax: 0.10.0
libtpu: 0.0.40
codegen_flags: <defaults>
</compile_context>

<pallas_src>
import jax
import jax.numpy as jnp
from jax.experimental import pallas as pl
from jax.experimental.pallas import tpu as pltpu


_LANES = 128
_MIN_PALLAS_ELEMENTS = 4096    # below this, XLA fused elementwise wins


def _sublane_granule(dtype):
    # Packed min sublane tile: f32 -> 8, bf16 -> 16, int8/fp8 -> 32.
    itemsize = jnp.dtype(dtype).itemsize
    return max(8, 32 // max(itemsize, 1))


def _vmem_budget_bytes():
    # Per-core VMEM capacity with headroom: ~3/4 of physical, capped at 96 MiB.
    fallback = 64 * 1024 * 1024            # conservative (v7x-sized) fallback
    try:
        info = pltpu.get_tpu_info()
        cap = int(getattr(info, "vmem_capacity_bytes", 0)) or fallback
    except Exception:
        cap = fallback
    return min((cap * 3) // 4, 96 * 1024 * 1024)


def _wmv_kernel(w_ref, pt_ref, pi_ref, o_ref):
    # w_ref: SMEM (2,) f32 -> [weight_text, weight_image]
    wt = w_ref[0]
    wi = w_ref[1]
    # Upcast in-register only (HBM traffic stays in the input dtype).
    s = wt * pt_ref[...].astype(jnp.float32) + wi * pi_ref[...].astype(jnp.float32)
    # Exact sigmoid; exp and the divide run on the EUP, hidden under the DMAs.
    o_ref[...] = (1.0 / (1.0 + jnp.exp(-s))).astype(o_ref.dtype)


def _wmv_forward(prob_text, prob_image, weight_text, weight_image,
                 *, tile_rows=None, min_pallas_elements=_MIN_PALLAS_ELEMENTS):
    assert prob_text.shape == prob_image.shape
    assert prob_text.dtype == prob_image.dtype
    shape = prob_text.shape
    dtype = prob_text.dtype
    n = prob_text.size

    wt = jnp.asarray(weight_text, dtype=jnp.float32)
    wi = jnp.asarray(weight_image, dtype=jnp.float32)

    # Tiny-input bypass: launch + DMA-setup overhead dwarfs the vector work.
    if n < min_pallas_elements:
        s = wt * prob_text.astype(jnp.float32) + wi * prob_image.astype(jnp.float32)
        return jax.nn.sigmoid(s).astype(dtype)

    w = jnp.stack([wt, wi])

    granule = _sublane_granule(dtype)
    itemsize = jnp.dtype(dtype).itemsize

    # Lane-dense (rows, 128) view.  Pad ONLY the lane remainder (<=127 elems);
    # ragged trailing row-blocks are left to Pallas (no pad to tile multiple,
    # no output slice copy when the input is already lane-aligned).
    rows = pl.cdiv(n, _LANES)
    pt = prob_text.reshape(-1)
    pi = prob_image.reshape(-1)
    padded = rows * _LANES != n
    if padded:
        pad = rows * _LANES - n
        pt = jnp.pad(pt, (0, pad))
        pi = jnp.pad(pi, (0, pad))
    pt = pt.reshape(rows, _LANES)
    pi = pi.reshape(rows, _LANES)

    vmem_limit = _vmem_budget_bytes()
    if tile_rows is None:
        # Byte-based tile sizing: 3 arrays x 2 pipeline buffers + ~25% headroom.
        per_buffer_bytes = vmem_limit // 8
        cap_rows = max(granule, per_buffer_bytes // (_LANES * itemsize))
        cap_rows = (cap_rows // granule) * granule
        tile_rows = min(cap_rows, ((rows + granule - 1) // granule) * granule)
    assert tile_rows % granule == 0 and tile_rows > 0

    grid = (pl.cdiv(rows, tile_rows),)

    out = pl.pallas_call(
        _wmv_kernel,
        out_shape=jax.ShapeDtypeStruct((rows, _LANES), dtype),
        grid=grid,
        in_specs=[
            pl.BlockSpec(memory_space=pltpu.SMEM),                 # (2,) weights
            pl.BlockSpec((tile_rows, _LANES), lambda i: (i, 0)),   # prob_text tile
            pl.BlockSpec((tile_rows, _LANES), lambda i: (i, 0)),   # prob_image tile
        ],
        out_specs=pl.BlockSpec((tile_rows, _LANES), lambda i: (i, 0)),
        compiler_params=pltpu.CompilerParams(
            # "parallel" shards the rows axis across v7x's 2 TCs; if profiling
            # shows otherwise, switch this axis to pltpu.CORE_PARALLEL.
            dimension_semantics=("parallel",),
            vmem_limit_bytes=vmem_limit,
        ),
    )(w, pt, pi)

    if padded:
        return out.reshape(-1)[:n].reshape(shape)
    return out.reshape(shape)


# --- differentiable public entry point (weights are learnable parameters) ---

@jax.custom_vjp
def weighted_majority_voting(prob_text, prob_image, weight_text, weight_image):
    return _wmv_forward(prob_text, prob_image, weight_text, weight_image)


def _wmv_vjp_fwd(prob_text, prob_image, weight_text, weight_image):
    out = _wmv_forward(prob_text, prob_image, weight_text, weight_image)
    return out, (prob_text, prob_image, weight_text, weight_image, out)


def _wmv_vjp_bwd(res, g):
    pt, pi, wt, wi, out = res
    out_f = out.astype(jnp.float32)
    ds = g.astype(jnp.float32) * out_f * (1.0 - out_f)     # d sigmoid(s)/ds
    wt_f = jnp.asarray(wt, jnp.float32)
    wi_f = jnp.asarray(wi, jnp.float32)
    d_pt = (wt_f * ds).astype(pt.dtype)
    d_pi = (wi_f * ds).astype(pi.dtype)
    d_wt = jnp.sum(ds * pt.astype(jnp.float32)).astype(jnp.asarray(wt).dtype)
    d_wi = jnp.sum(ds * pi.astype(jnp.float32)).astype(jnp.asarray(wi).dtype)
    return d_pt, d_pi, d_wt, d_wi


weighted_majority_voting.defvjp(_wmv_vjp_fwd, _wmv_vjp_bwd)


if __name__ == "__main__":
    key = jax.random.PRNGKey(0)
    k1, k2, k3, k4, k5, k6, k7, k8 = jax.random.split(key, 8)

    # Deterministic parameter init, matching nn.Parameter(torch.tensor(0.5)).
    weight_text = jnp.float32(0.5)
    weight_image = jnp.float32(0.5)

    def ref(pt, pi):
        return jax.nn.sigmoid(
            weight_text * pt.astype(jnp.float32)
            + weight_image * pi.astype(jnp.float32))

    # Case 1: tiny (4, 16) probabilities -> XLA-fused bypass path (exact).
    B, C = 4, 16
    pt_s = jax.nn.softmax(jax.random.normal(k1, (B, C), dtype=jnp.float32), axis=-1)
    pi_s = jax.nn.softmax(jax.random.normal(k2, (B, C), dtype=jnp.float32), axis=-1)
    out = jax.block_until_ready(
        weighted_majority_voting(pt_s, pi_s, weight_text, weight_image))
    assert out.shape == (B, C)
    assert jnp.allclose(out, ref(pt_s, pi_s), atol=1e-5, rtol=1e-5)

    # Case 2: Pallas path, forced, with lane padding + ragged trailing block.
    #   64*51 = 3264 elems -> 26 lane-rows; tile_rows=8 -> grid of 4, last ragged.
    B, C = 64, 51
    pt = jax.nn.softmax(jax.random.normal(k3, (B, C), dtype=jnp.float32), axis=-1)
    pi = jax.nn.softmax(jax.random.normal(k4, (B, C), dtype=jnp.float32), axis=-1)
    out = jax.block_until_ready(
        _wmv_forward(pt, pi, weight_text, weight_image,
                     tile_rows=8, min_pallas_elements=0))
    assert out.shape == (B, C)
    assert jnp.allclose(out, ref(pt, pi), atol=1e-5, rtol=1e-5)   # exact sigmoid now

    # Case 3: Pallas path with default byte-budget auto tiling, lane-aligned
    # (no pad, no output slice): 512*128 elems -> single big tile.
    B, C = 512, 128
    pt = jax.nn.softmax(jax.random.normal(k5, (B, C), dtype=jnp.float32), axis=-1)
    pi = jax.nn.softmax(jax.random.normal(k6, (B, C), dtype=jnp.float32), axis=-1)
    out = jax.block_until_ready(
        weighted_majority_voting(pt, pi, weight_text, weight_image))
    assert out.shape == (B, C)
    assert jnp.allclose(out, ref(pt, pi), atol=1e-5, rtol=1e-5)

    # Case 4: bfloat16 inputs -> granule-16 tiles, packed sublane layout.
    B, C = 256, 256
    pt = jax.nn.softmax(jax.random.normal(k7, (B, C), dtype=jnp.float32), axis=-1
                        ).astype(jnp.bfloat16)
    pi = jax.nn.softmax(jax.random.normal(k8, (B, C), dtype=jnp.float32), axis=-1
                        ).astype(jnp.bfloat16)
    out = jax.block_until_ready(
        weighted_majority_voting(pt, pi, weight_text, weight_image))
    assert out.shape == (B, C) and out.dtype == jnp.bfloat16
    assert jnp.allclose(out.astype(jnp.float32), ref(pt, pi), atol=8e-3, rtol=8e-3)

    # Case 5: gradients flow to probabilities and both learnable weights.
    def loss_kernel(a, b, w1, w2):
        return jnp.sum(weighted_majority_voting(a, b, w1, w2))

    def loss_ref(a, b, w1, w2):
        return jnp.sum(jax.nn.sigmoid(w1 * a + w2 * b))

    gk = jax.grad(loss_kernel, argnums=(0, 1, 2, 3))(pt_s, pi_s, weight_text, weight_image)
    gr = jax.grad(loss_ref, argnums=(0, 1, 2, 3))(pt_s, pi_s, weight_text, weight_image)
    for a, b in zip(gk, gr):
        assert jnp.allclose(a, b, atol=1e-4, rtol=1e-4)

    print("KERNEL_OK")
</pallas_src>

<mosaic_0001>
module attributes {stable_mosaic.version = 11 : i64} {
  func.func @_wmv_kernel(%arg0: i32, %arg1: memref<2xf32, #tpu.memory_space<smem>>, %arg2: memref<8x128xf32, #tpu.memory_space<vmem>>, %arg3: memref<8x128xf32, #tpu.memory_space<vmem>>, %arg4: memref<8x128xf32, #tpu.memory_space<vmem>>) attributes {dimension_semantics = [#tpu.dimension_semantics<parallel>], iteration_bounds = array<i64: 4>, scalar_prefetch = 0 : i64, scratch_operands = 0 : i64, tpu.core_type = #tpu.core_type<tc>, window_params = [{transform_indices = @transform_0, window_bounds = array<i64: 2>}, {transform_indices = @transform_1, window_bounds = array<i64: 8, 128>}, {transform_indices = @transform_2, window_bounds = array<i64: 8, 128>}, {transform_indices = @transform_3, window_bounds = array<i64: 8, 128>}]} {
    %c0 = arith.constant 0 : index
    %0 = memref.load %arg1[%c0] : memref<2xf32, #tpu.memory_space<smem>>
    %c1 = arith.constant 1 : index
    %1 = memref.load %arg1[%c1] : memref<2xf32, #tpu.memory_space<smem>>
    %c0_0 = arith.constant 0 : index
    %c0_1 = arith.constant 0 : index
    %2 = vector.load %arg2[%c0_0, %c0_1] : memref<8x128xf32, #tpu.memory_space<vmem>>, vector<8x128xf32>
    %3 = vector.broadcast %0 : f32 to vector<8x128xf32>
    %4 = arith.mulf %3, %2 : vector<8x128xf32>
    %c0_2 = arith.constant 0 : index
    %c0_3 = arith.constant 0 : index
    %5 = vector.load %arg3[%c0_2, %c0_3] : memref<8x128xf32, #tpu.memory_space<vmem>>, vector<8x128xf32>
    %6 = vector.broadcast %1 : f32 to vector<8x128xf32>
    %7 = arith.mulf %6, %5 : vector<8x128xf32>
    %8 = arith.addf %4, %7 : vector<8x128xf32>
    %cst = arith.constant 0.000000e+00 : f32
    %9 = vector.broadcast %cst : f32 to vector<8x128xf32>
    %10 = arith.subf %9, %8 : vector<8x128xf32>
    %11 = math.exp %10 : vector<8x128xf32>
    %cst_4 = arith.constant 1.000000e+00 : f32
    %12 = vector.broadcast %cst_4 : f32 to vector<8x128xf32>
    %13 = arith.addf %12, %11 : vector<8x128xf32>
    %cst_5 = arith.constant 1.000000e+00 : f32
    %14 = vector.broadcast %cst_5 : f32 to vector<8x128xf32>
    %15 = arith.divf %14, %13 : vector<8x128xf32>
    %c0_6 = arith.constant 0 : index
    %c0_7 = arith.constant 0 : index
    %16 = vector.load %arg4[%c0_6, %c0_7] : memref<8x128xf32, #tpu.memory_space<vmem>>, vector<8x128xf32>
    tpu.vector_store %arg4[%c0_6, %c0_7], %15 {strides = array<i32>} : memref<8x128xf32, #tpu.memory_space<vmem>>, vector<8x128xf32>,
    return
  }
  func.func @transform_0(%arg0: i32) -> i32 {
    %c0_i32 = arith.constant 0 : i32
    %c0_i32_0 = arith.constant 0 : i32
    return %c0_i32 : i32
  }
  func.func @transform_1(%arg0: i32) -> (i32, i32) {
    %c0_i32 = arith.constant 0 : i32
    %c0_i32_0 = arith.constant 0 : i32
    return %arg0, %c0_i32 : i32, i32
  }
  func.func @transform_2(%arg0: i32) -> (i32, i32) {
    %c0_i32 = arith.constant 0 : i32
    %c0_i32_0 = arith.constant 0 : i32
    return %arg0, %c0_i32 : i32, i32
  }
  func.func @transform_3(%arg0: i32) -> (i32, i32) {
    %c0_i32 = arith.constant 0 : i32
    %c0_i32_0 = arith.constant 0 : i32
    return %arg0, %c0_i32 : i32, i32
  }
}

</mosaic_0001>

<bundles_post_ra>
// kernel: tpu_custom_call.1
= control target key start
LH: loop header
LB: loop body
LE: loop exit
PB: predicated region body
PF: predicated region fallthrough
CT: control target
= control target key end

     0   :  { %s815_s0 = inlined_call_operand.hbm [shape: f32[2], index: 0, kind: input, shape index: {}]   ;;  %s816_s1 = inlined_call_operand.hbm [shape: f32[26,128], index: 1, kind: input, shape index: {}]   ;;  %s817_s2 = inlined_call_operand.hbm [shape: f32[26,128], index: 2, kind: input, shape index: {}]   ;;  %s818_s3 = inlined_call_operand.hbm [shape: f32[26,128], index: 3, kind: output, shape index: {}]  }
   0x1   :  { %819 = sst [smem:[#allocation14_spill]] %s815_s0 }
   0x2   :  { %8 = vsyncpa [#allocation5], 0 }
   0x3   :  { %9 = vsyncpa [#allocation3], 0 }
   0x4   :  { %11 = vsyncpa [#allocation3 + $0x1], 0 }
   0x5   :  { %12 = vsyncpa [#allocation8], 0 }
   0x6   :  { %14 = vsyncpa [#allocation8 + $0x1], 0 }
   0x7   :  { %15 = vsyncpa [#allocation4], 0 }
   0x8   :  { %17 = vsyncpa [#allocation4 + $0x1], 0  ;;  %s647_s12 = smov 0   ;;  %s649_s13 = smov 0  }
   0x9   :  { %s651_s14 = smov 0   ;;  %s653_s15 = smov 0  }
   0xa LB: > { %s668_s16 = sadd.s32 4294967295, %s624_s15   ;;  %s391_s17 = sadd.s32 4294967294, %s624_s15   ;;  %s624_s15 = sphi %s653_s15, %s829_s15   ;;  %s620_s14 = sphi %s651_s14, %s828_s14   ;;  %s616_s13 = sphi %s649_s13, %s827_s13   ;;  %s612_s12 = sphi %s647_s12, %s826_s12  }
   0xb   : > { %p64_p0 = scmp.ne.s32.totalorder %s616_s13, %s612_s12  ;;  %p65_p1 = scmp.eq.s32.totalorder %s668_s16, 0 }
   0xc   : > { %p114_p2 = scmp.eq.s32.totalorder %s668_s16, 3  ;;  %p120_p3 = scmp.eq.s32.totalorder %s391_s17, 3 }
   0xd   : > { %p677_p4 = por %p65_p1, %p64_p0  ;;  %p392_p5 = scmp.ge.s32.totalorder %s624_s15, 1 }
   0xe   : > { %p682_p6 = por %p120_p3, %p64_p0  ;;  %p127_p7 = scmp.lt.s32.totalorder %s624_s15, 5 }
   0xf   : > { %s822_s0 = sld [smem:[#allocation14_spill]]  ;;  %s697_s24 = sadd.s32 1, %s624_s15  }
  0x10   : > { %p690_p8 = pnand %p392_p5, %p127_p7  ;;  %s48_s25 = ssub.s32 %s624_s15, %s697_s24 }
  0x11   : > { %p49_p11 = scmp.eq.s32.totalorder %s48_s25, 0  ;;  %s51_s26 = sadd.s32 1, %s620_s14 }
  0x12   : > { %p419_p9 = pneg %p690_p8  ;;  %p58_p12 = scmp.ne.s32.totalorder %s620_s14, %s616_s13 }
  0x13   : > { %s626_s27 = smov [#allocation2]   ;;  %p59_p13 = scmp.eq.s32.totalorder %s624_s15, 0 }
  0x14   : > { %p420_p10 = pnand %p419_p9, %p65_p1  ;;  %p712_p0 = por %p114_p2, %p58_p12 }
  0x15   : > { %s139_s22 = sshll.u32 %s822_s0, 4  ;;  %p435_p3 = scmp.lt.s32.totalorder %s624_s15, 4  ;;  %s140_s22 = int_to_ptr.hbm [resolvable:$true] %s139_s22 }
  0x16   : > { %422 = dma.hbm_to_smem (!%p420_p10), %s140_s22, 16, %s626_s27, [#allocation5]  }
  0x17   : > { %s707_s28 = scalar_select %p49_p11, %s620_s14, %s51_s26  }
  0x18   : > { %s718_s30 = sand.u32 1, %s620_s14   ;;  %p60_p5 = por %p59_p13, %p58_p12 }
  0x19   : > { %s395_s4 = sshll.u32 %s718_s30, 3  ;;  %s396_s5 = sshll.u32 %s624_s15, 3 }
  0x1a   : > { %s158_s8 = scalar_lea.hbm %s816_s1, %s396_s5  ;;  %s154_s10 = scalar_lea.vmem [#allocation6], %s395_s4 }
  0x1b   : > { %s160_s9 = sshll.u32 %s158_s8, 4  ;;  %s162_s11 = sshll.u32 %s154_s10, 4  ;;  %s161_s9 = int_to_ptr.hbm [resolvable:$true] %s160_s9  ;;  %s163_s11 = int_to_ptr.vmem [resolvable:$true] %s162_s11 }
  0x1c   : > { %p725_p2 = pnand %p435_p3, %p60_p5  ;;  %s177_s22 = scalar_lea.hbm %s817_s2, %s396_s5 }
  0x1d   : > { %s179_s25 = sshll.u32 %s177_s22, 4  ;;  %s151_s26 = scalar_lea.sflag [#allocation3], %s718_s30  ;;  %s180_s25 = int_to_ptr.hbm [resolvable:$true] %s179_s25 }
  0x1e   : > { %s490_s27 = sshra.s32 %s161_s9, 4  ;;  %p494_p9 = pneg %p725_p2  ;;  %s491_s27 = int_to_ptr.hbm [resolvable:$true] %s490_s27 }
  0x1f   : > { %s492_s6 = scalar_lea.hbm %s491_s27, 8  ;;  %s497_s10 = scalar_lea.hbm %s816_s1, 32 }
  0x20   : > { %p493_p7 = scmp.ne.s32.totalorder %s491_s27, %s492_s6  ;;  %p498_p12 = scmp.lt.s32.totalorder %s491_s27, %s816_s1 }
  0x21   : > { %p499_p13 = scmp.lt.s32.totalorder %s497_s10, %s492_s6 }
  0x22   : > { %p495_p10 = pnand %p494_p9, %p493_p7 }
  0x23   : > { %p500_p3 = por %p499_p13, %p498_p12 }
  0x24   : > { %p496_p11 = pneg %p495_p10 }
  0x26   : > { %p501_p5 = pnand %p500_p3, %p496_p11 }
  0x28   : > { %504 = shalt.err (!%p501_p5)
}
  0x29   : > { %426 = dma.hbm_to_vmem [thread:$0]  (!%p725_p2), %s161_s9, 128, %s163_s11, %s151_s26  }
  0x2a   : > { %s173_s5 = scalar_lea.vmem [#allocation7], %s395_s4  ;;  %s170_s0 = scalar_lea.sflag [#allocation8], %s718_s30 }
  0x2b   : > { %s181_s22 = sshll.u32 %s173_s5, 4  ;;  %s520_s7 = sshra.s32 %s180_s25, 4  ;;  %s182_s22 = int_to_ptr.vmem [resolvable:$true] %s181_s22  ;;  %s521_s7 = int_to_ptr.hbm [resolvable:$true] %s520_s7 }
  0x2c   : > { %s522_s8 = scalar_lea.hbm %s521_s7, 8  ;;  %s527_s10 = scalar_lea.hbm %s817_s2, 32 }
  0x2d   : > { %p523_p7 = scmp.ne.s32.totalorder %s521_s7, %s522_s8  ;;  %p528_p11 = scmp.lt.s32.totalorder %s521_s7, %s817_s2 }
  0x2e   : > { %p529_p13 = scmp.lt.s32.totalorder %s527_s10, %s522_s8 }
  0x2f   : > { %p525_p10 = pnand %p523_p7, %p494_p9 }
  0x30   : > { %p530_p3 = por %p529_p13, %p528_p11 }
  0x31   : > { %p526_p12 = pneg %p525_p10 }
  0x33   : > { %p531_p5 = pnand %p530_p3, %p526_p12 }
  0x35   : > { %534 = shalt.err (!%p531_p5)
}
  0x36   : > { %429 = dma.hbm_to_vmem [thread:$0]  (!%p725_p2), %s180_s25, 128, %s182_s22, %s170_s0  }
  0x37   : > { %190 = sbr.rel (%p690_p8) target bundleno = 114 (0x72), region = 32 }
  0x3c   : > { %595 = dma.done.wait (%p65_p1), [#allocation5], 16  }
  0x3d   : > { %597 = vsyncadd (%p65_p1), [#allocation5], 4294967280  ;;  %s765_s30 = sand.u32 1, %s616_s13  }
  0x3e   : > { %s768_s4 = sshll.u32 %s765_s30, 3  ;;  %s198_s9 = scalar_lea.sflag [#allocation3], %s765_s30 }
  0x3f   : > { %s201_s0 = scalar_lea.vmem [#allocation6], %s768_s4 }
  0x40   : > { %599 = dma.done.wait (%p677_p4), %s198_s9, 128  }
  0x41   : > { %601 = vsyncadd (%p677_p4), %s198_s9, 4294967168  ;;  %s208_s23 = scalar_lea.sflag [#allocation8], %s765_s30  ;;  %s211_s11 = scalar_lea.vmem [#allocation7], %s768_s4 }
  0x42   : > { %603 = dma.done.wait (%p677_p4), %s208_s23, 128  }
  0x43   : > { %605 = vsyncadd (%p677_p4), %s208_s23, 4294967168 }
  0x44   : > { %217 = sfence }
  0x45   : > { %s241_s17 = sld [smem:[#allocation2]]  ;;  %v243_v0 = vld [vmem:[%s201_s0] sm:$0xff]  ;;  %v246_v1 = vld [vmem:[%s211_s11] sm:$0xff]  ;;  %s406_s18 = sshll.u32 %s668_s16, 3 }
  0x46   : > { %s404_s25 = sld [smem:[#allocation2 + $0x1]]  ;;  %s281_s22 = scalar_lea.hbm %s818_s3, %s406_s18 }
  0x47   : > { %s240_s7 = scalar_lea.vmem [#allocation9], %s768_s4  ;;  %s285_s27 = sshll.u32 %s281_s22, 4  ;;  %s286_s27 = int_to_ptr.hbm [resolvable:$true] %s285_s27 }
  0x48   : > { %s283_s8 = sshll.u32 %s240_s7, 4  ;;  %s271_s16 = scalar_lea.sflag [#allocation4], %s765_s30  ;;  %s284_s8 = int_to_ptr.vmem [resolvable:$true] %s283_s8 }
  0x49   : > { %s564_s6 = sshra.s32 %s286_s27, 4  ;;  %s570_s4 = scalar_lea.hbm %s818_s3, 32  ;;  %s565_s6 = int_to_ptr.hbm [resolvable:$true] %s564_s6 }
  0x4a   : > { %s566_s10 = scalar_lea.hbm %s565_s6, 8  ;;  %p571_p2 = scmp.lt.s32.totalorder %s565_s6, %s818_s3 }
  0x4b   : > { %v244_v2 = vstv %s241_s17  ;;  %p567_p1 = scmp.ne.s32.totalorder %s565_s6, %s566_s10  ;;  %p572_p9 = scmp.lt.s32.totalorder %s570_s4, %s566_s10 }
  0x4c   : > { %v245_v3 = vmul.f32 %v244_v2, %v243_v0  ;;  %v247_v4 = vstv %s404_s25 }
  0x4d   : > { %v248_v5 = vmul.f32 %v247_v4, %v246_v1  ;;  %p568_p4 = pnand %p567_p1, %p712_p0  ;;  %p573_p7 = por %p572_p9, %p571_p2 }
  0x4f   : > { %v249_v6 = vadd.f32 %v248_v5, %v245_v3  ;;  %p569_p8 = pneg %p568_p4 }
  0x51   : > { %v250_v7 = vsub.f32 0.0, %v249_v6  ;;  %p574_p10 = pnand %p573_p7, %p569_p8 }
  0x53   : > { %v251_v8 = vmul.f32 1.442695, %v250_v7 }
  0x55   : > { %471 = vpow2.f32 %v251_v8 }
  0x5b   : > { %v472_v9 = vpop.eup %471 }
  0x5c   : > { %v253_v10 = vadd.f32 1.0, %v472_v9 }
  0x5e   : > { %473 = vrcp.f32 %v253_v10  ;;  %v265_v13 = vand.u32 2147483648, %v253_v10  ;;  %vm259_vm0 = vweird.f32 %v253_v10  ;;  %v263_v15 = vand.u32 2147483647, %v253_v10 }
  0x60   : > { %v266_v17 = vor.u32 1.1754944e-38, %v265_v13  ;;  %vm264_vm3 = vcmp.eq.f32.partialorder %v263_v15, 8.507059e+37 }
  0x64   : > { %v474_v11 = vpop.eup %473 }
  0x65   : > { %v255_v12 = vmul.f32 %v474_v11, %v253_v10  ;;  %vm260_vm1 = vweird.f32 %v474_v11 }
  0x66   : > { %vm261_vm2 = vmor %vm259_vm0, %vm260_vm1 }
  0x67   : > { %v256_v14 = vsub.f32 1.0, %v255_v12 }
  0x69   : > { %v257_v16 = vmul.f32 %v474_v11, %v256_v14 }
  0x6b   : > { %v258_v18 = vadd.f32 %v474_v11, %v257_v16 }
  0x6d   : > { %v262_v19 = vsel %vm261_vm2, %v474_v11, %v258_v18 }
  0x6e   : > { %v267_v20 = vsel %vm264_vm3, %v266_v17, %v262_v19 }
  0x6f   : > { %269 = vst [vmem:[%s240_s7] sm:$0xff] %v267_v20 }
  0x70   : > { %577 = shalt.err (!%p574_p10)
}
  0x71   : > { %417 = dma.vmem_to_hbm [thread:$0]  (%p712_p0), %s284_s8, 128, %s286_s27, %s271_s16  }
  0x72 PF: > { %p437_p12 = scmp.ge.s32.totalorder %s624_s15, 2  ;;  %s297_s30 = sand.u32 1, %s612_s12  }
  0x73   : > { %s298_s23 = scalar_lea.sflag [#allocation4], %s297_s30 }
  0x74   : > { %p431_p11 = pnand %p437_p12, %p682_p6 }
  0x76   : > { %p432_p13 = pneg %p431_p11 }
  0x78   : > { %607 = dma.done.wait (%p432_p13), %s298_s23, 128  }
  0x79   : > { %609 = vsyncadd (%p432_p13), %s298_s23, 4294967168  ;;  %p20_p3 = scmp.ge.s32.totalorder %s697_s24, 6   ;;  %s826_s12 = smov %s616_s13 }
  0x7a   : > { %s827_s13 = smov %s620_s14  ;;  %s828_s14 = smov %s707_s28 }
  0x7b   : > { %s829_s15 = smov %s697_s24  ;;  %22 = sbr.rel (!%p20_p3) target bundleno = 10 (0xa), region = 95 }
  0x80   :  { %304 = vsyncpa [#allocation3], 1 }
  0x81   :  { %306 = vsyncpa [#allocation3 + $0x1], 1 }
  0x82   :  { %307 = vsyncpa [#allocation8], 1 }
  0x83   :  { %309 = vsyncpa [#allocation8 + $0x1], 1 }
  0x84   :  { %310 = vsyncpa [#allocation4], 1 }
  0x85   :  { %312 = vsyncpa [#allocation4 + $0x1], 1 }
  0x86   :  { %313 = vsyncpa [#allocation5], 1 }
  0x87   :  { %315 = vsyncpa [#allocation5 + $0x1], 1 }

</bundles_post_ra>
